<compile_context>
chip_gen: v7x
topology: tpu7x:2x2x1
jax: 0.10.0
libtpu: 0.0.40
codegen_flags: <defaults>
</compile_context>

<pallas_src>
import functools

import jax
import jax.numpy as jnp
from jax.experimental import pallas as pl
from jax.experimental.pallas import tpu as pltpu


def _bert_embedding_kernel(
    # scalar prefetch (SMEM)
    src_ref,                 # (B, S) int32 token ids (DMA gather addresses)
    # inputs
    seg_ref,                 # (1, S_tile, 1) int32 segment ids (VMEM)
    word_hbm,                # (V, E) word embedding table, raw HBM ref (pl.ANY)
    pos_ref,                 # (S_tile, E) position-embedding rows for this tile
    segt_ref,                # (3, E) segment embedding table
    gamma_ref,               # (1, E) LayerNorm scale
    beta_ref,                # (1, E) LayerNorm shift
    # outputs
    out_ref,                 # (1, S_tile, E)
    # scratch
    word_buf,                # VMEM (S_tile, E): staging for gathered word rows
    dma_sems,                # DMA semaphores, (S_tile,)
    *, eps, s_tile, vocab_size, apply_layer_norm):
    b = pl.program_id(0)
    t = pl.program_id(1)
    base = t * s_tile

    def for_each_token(body):
        # Fully static loop for small tiles; capped unroll otherwise so we do
        # not blow up instruction count / vreg pressure for S_tile up to 128.
        if s_tile <= 16:
            for i in range(s_tile):
                body(i)
        else:
            jax.lax.fori_loop(0, s_tile,
                              lambda i, c: (body(i), c)[1], 0, unroll=8)

    # --- 1. Issue one row DMA per token (HBM -> VMEM); all stay in flight. ---
    def issue(i):
        w_id = jnp.clip(src_ref[b, base + i], 0, vocab_size - 1)
        pltpu.make_async_copy(word_hbm.at[pl.ds(w_id, 1), :],
                              word_buf.at[pl.ds(i, 1), :],
                              dma_sems.at[i]).start()

    for_each_token(issue)

    # --- 2. While the gathers are in flight: vectorized pos + seg embedding. ---
    pos = pos_ref[...].astype(jnp.float32)                        # (S_tile, E)
    seg_ids = seg_ref[0]                                          # (S_tile, 1)
    g0 = segt_ref[pl.ds(0, 1), :].astype(jnp.float32)             # (1, E)
    g1 = segt_ref[pl.ds(1, 1), :].astype(jnp.float32)
    g2 = segt_ref[pl.ds(2, 1), :].astype(jnp.float32)
    seg_emb = jnp.where(seg_ids == 0, g0,
                        jnp.where(seg_ids == 1, g1, g2))          # (S_tile, E)
    partial_sum = pos + seg_emb

    # --- 3. Wait for the word-row gathers, then finish the sum. ---
    def wait(i):
        w_id = jnp.clip(src_ref[b, base + i], 0, vocab_size - 1)
        pltpu.make_async_copy(word_hbm.at[pl.ds(w_id, 1), :],
                              word_buf.at[pl.ds(i, 1), :],
                              dma_sems.at[i]).wait()

    for_each_token(wait)

    emb = word_buf[...].astype(jnp.float32) + partial_sum

    # --- 4. Fused LayerNorm over the embedding dim; write the full tile. ---
    if apply_layer_norm:
        mean = jnp.mean(emb, axis=-1, keepdims=True)
        var = jnp.mean(jnp.square(emb - mean), axis=-1, keepdims=True)
        emb = (emb - mean) * jax.lax.rsqrt(var + eps)
        emb = emb * gamma_ref[...] + beta_ref[...]

    # nn.Dropout is identity at inference time -> no-op.
    # TODO(synk): training-mode dropout (pltpu.prng_*) not implemented.
    out_ref[0] = emb.astype(out_ref.dtype)


def bert_embedding(src, seg, word_table, pos_table, seg_table, gamma, beta,
                   *, eps=1e-6, apply_layer_norm=True, s_tile=None,
                   out_dtype=jnp.float32):
    """Forward pass of BertEmbedding (eval mode: dropout is identity)."""
    B, S = src.shape
    V, E = word_table.shape
    P = pos_table.shape[0]
    if S > P:
        raise ValueError(f"sequence length {S} exceeds max_seq_length {P}")

    if s_tile is None:
        s_tile = min(S, 128)
    if S % s_tile != 0 or s_tile % 8 != 0:
        raise ValueError("S must be a multiple of s_tile and s_tile a multiple of 8")

    src = src.astype(jnp.int32)
    seg3 = seg.astype(jnp.int32).reshape(B, S, 1)   # (S_tile, 1) column per tile
    gamma2 = gamma.reshape(1, E)
    beta2 = beta.reshape(1, E)

    kernel = functools.partial(
        _bert_embedding_kernel, eps=eps, s_tile=s_tile, vocab_size=V,
        apply_layer_norm=apply_layer_norm)

    grid = (B, S // s_tile)

    return pl.pallas_call(
        kernel,
        out_shape=jax.ShapeDtypeStruct((B, S, E), out_dtype),
        grid_spec=pltpu.PrefetchScalarGridSpec(
            num_scalar_prefetch=1,                  # src ids -> SMEM
            grid=grid,
            in_specs=[
                pl.BlockSpec((1, s_tile, 1), lambda b, t, src_r: (b, t, 0)),  # seg ids
                pl.BlockSpec(memory_space=pl.ANY),                            # word table (HBM)
                pl.BlockSpec((s_tile, E), lambda b, t, src_r: (t, 0)),        # pos rows
                pl.BlockSpec((3, E), lambda b, t, src_r: (0, 0)),             # seg table
                pl.BlockSpec((1, E), lambda b, t, src_r: (0, 0)),             # gamma
                pl.BlockSpec((1, E), lambda b, t, src_r: (0, 0)),             # beta
            ],
            out_specs=pl.BlockSpec((1, s_tile, E),
                                   lambda b, t, src_r: (b, t, 0)),
            scratch_shapes=[
                pltpu.VMEM((s_tile, E), word_table.dtype),
                pltpu.SemaphoreType.DMA((s_tile,)),
            ],
        ),
        compiler_params=pltpu.CompilerParams(
            dimension_semantics=("parallel", "parallel"),
            vmem_limit_bytes=32 * 1024 * 1024,      # fits v5e/v6e/v7x physical VMEM
        ),
    )(src, seg3, word_table, pos_table, seg_table, gamma2, beta2)


if __name__ == "__main__":
    B, S, E = 2, 8, 128           # batch, seq len, emb_size
    vocab_size = 64
    max_seq_length = 16
    eps = 1e-6

    key = jax.random.PRNGKey(0)
    k = jax.random.split(key, 5)
    word_table = jax.random.normal(k[0], (vocab_size, E), jnp.float32) * 0.02
    pos_table = jax.random.normal(k[1], (max_seq_length, E), jnp.float32) * 0.02
    seg_table = jax.random.normal(k[2], (3, E), jnp.float32) * 0.02
    gamma = jnp.ones((E,), jnp.float32)
    beta = jnp.zeros((E,), jnp.float32)

    src = jax.random.randint(k[3], (B, S), 0, vocab_size, dtype=jnp.int32)
    seg = jax.random.randint(k[4], (B, S), 1, 3, dtype=jnp.int32)

    out = bert_embedding(src, seg, word_table, pos_table, seg_table, gamma, beta,
                         eps=eps)
    out = jax.block_until_ready(out)

    # Pure-JAX reference for correctness.
    pos_ids = jnp.arange(S)
    ref = word_table[src] + pos_table[pos_ids][None, :, :] + seg_table[seg]
    mean = ref.mean(-1, keepdims=True)
    var = ((ref - mean) ** 2).mean(-1, keepdims=True)
    ref = (ref - mean) * jax.lax.rsqrt(var + eps) * gamma + beta

    assert out.shape == (B, S, E)
    assert jnp.allclose(out, ref, atol=1e-5, rtol=1e-5), "mismatch vs reference"
    print("KERNEL_OK")
</pallas_src>

<mosaic_0001>
module attributes {stable_mosaic.version = 11 : i64} {
  func.func @_bert_embedding_kernel(%arg0: i32, %arg1: i32, %arg2: memref<2x8xi32, #tpu.memory_space<smem>>, %arg3: memref<1x8x1xi32, #tpu.memory_space<vmem>>, %arg4: memref<64x128xf32, #tpu.memory_space<any>>, %arg5: memref<8x128xf32, #tpu.memory_space<vmem>>, %arg6: memref<3x128xf32, #tpu.memory_space<vmem>>, %arg7: memref<1x128xf32, #tpu.memory_space<vmem>>, %arg8: memref<1x128xf32, #tpu.memory_space<vmem>>, %arg9: memref<1x8x128xf32, #tpu.memory_space<vmem>>, %arg10: memref<8x128xf32, #tpu.memory_space<vmem>>, %arg11: memref<8x!tpu.dma_semaphore, #tpu.memory_space<semaphore_mem>>) attributes {dimension_semantics = [#tpu.dimension_semantics<parallel>, #tpu.dimension_semantics<parallel>], iteration_bounds = array<i64: 2, 1>, scalar_prefetch = 1 : i64, scratch_operands = 2 : i64, tpu.core_type = #tpu.core_type<tc>, window_params = [{transform_indices = @transform_0, window_bounds = array<i64: 1, 8, 1>}, {}, {transform_indices = @transform_2, window_bounds = array<i64: 8, 128>}, {pipeline_mode = #tpu.pipeline_mode<synchronous>, transform_indices = @transform_3, window_bounds = array<i64: 3, 128>}, {pipeline_mode = #tpu.pipeline_mode<synchronous>, transform_indices = @transform_4, window_bounds = array<i64: 1, 128>}, {pipeline_mode = #tpu.pipeline_mode<synchronous>, transform_indices = @transform_5, window_bounds = array<i64: 1, 128>}, {transform_indices = @transform_6, window_bounds = array<i64: 1, 8, 128>}]} {
    %c8_i32 = arith.constant 8 : i32
    %0 = arith.muli %arg1, %c8_i32 : i32
    %c0_i32 = arith.constant 0 : i32
    %1 = arith.addi %0, %c0_i32 : i32
    %2 = arith.index_cast %arg0 : i32 to index
    %3 = arith.index_cast %1 : i32 to index
    %4 = memref.load %arg2[%2, %3] : memref<2x8xi32, #tpu.memory_space<smem>>
    %c0_i32_0 = arith.constant 0 : i32
    %c63_i32 = arith.constant 63 : i32
    %5 = arith.maxsi %c0_i32_0, %4 : i32
    %6 = arith.minsi %c63_i32, %5 : i32
    %c0_i32_1 = arith.constant 0 : i32
    %c0_i32_2 = arith.constant 0 : i32
    %7 = tpu.memref_slice %arg4[%6, %c0_i32_2] : memref<64x128xf32, #tpu.memory_space<any>> -> memref<1x128xf32, #tpu.memory_space<any>>
    %c0_i32_3 = arith.constant 0 : i32
    %c0_i32_4 = arith.constant 0 : i32
    %8 = tpu.memref_slice %arg10[%c0_i32_3, %c0_i32_4] : memref<8x128xf32, #tpu.memory_space<vmem>> -> memref<1x128xf32, #tpu.memory_space<vmem>>
    %9 = tpu.memref_slice %arg11[%c0_i32_1] : memref<8x!tpu.dma_semaphore, #tpu.memory_space<semaphore_mem>> -> memref<1x!tpu.dma_semaphore, #tpu.memory_space<semaphore_mem>>
    %10 = tpu.memref_squeeze %9 : memref<1x!tpu.dma_semaphore, #tpu.memory_space<semaphore_mem>> -> memref<!tpu.dma_semaphore, #tpu.memory_space<semaphore_mem>>
    tpu.enqueue_dma source(%7 : memref<1x128xf32, #tpu.memory_space<any>>) target(%8 : memref<1x128xf32, #tpu.memory_space<vmem>>) target_semaphore(%10 : memref<!tpu.dma_semaphore, #tpu.memory_space<semaphore_mem>>)
    %c1_i32 = arith.constant 1 : i32
    %11 = arith.addi %0, %c1_i32 : i32
    %12 = arith.index_cast %arg0 : i32 to index
    %13 = arith.index_cast %11 : i32 to index
    %14 = memref.load %arg2[%12, %13] : memref<2x8xi32, #tpu.memory_space<smem>>
    %c0_i32_5 = arith.constant 0 : i32
    %c63_i32_6 = arith.constant 63 : i32
    %15 = arith.maxsi %c0_i32_5, %14 : i32
    %16 = arith.minsi %c63_i32_6, %15 : i32
    %c1_i32_7 = arith.constant 1 : i32
    %c0_i32_8 = arith.constant 0 : i32
    %17 = tpu.memref_slice %arg4[%16, %c0_i32_8] : memref<64x128xf32, #tpu.memory_space<any>> -> memref<1x128xf32, #tpu.memory_space<any>>
    %c1_i32_9 = arith.constant 1 : i32
    %c0_i32_10 = arith.constant 0 : i32
    %18 = tpu.memref_slice %arg10[%c1_i32_9, %c0_i32_10] : memref<8x128xf32, #tpu.memory_space<vmem>> -> memref<1x128xf32, #tpu.memory_space<vmem>>
    %19 = tpu.memref_slice %arg11[%c1_i32_7] : memref<8x!tpu.dma_semaphore, #tpu.memory_space<semaphore_mem>> -> memref<1x!tpu.dma_semaphore, #tpu.memory_space<semaphore_mem>>
    %20 = tpu.memref_squeeze %19 : memref<1x!tpu.dma_semaphore, #tpu.memory_space<semaphore_mem>> -> memref<!tpu.dma_semaphore, #tpu.memory_space<semaphore_mem>>
    tpu.enqueue_dma source(%17 : memref<1x128xf32, #tpu.memory_space<any>>) target(%18 : memref<1x128xf32, #tpu.memory_space<vmem>>) target_semaphore(%20 : memref<!tpu.dma_semaphore, #tpu.memory_space<semaphore_mem>>)
    %c2_i32 = arith.constant 2 : i32
    %21 = arith.addi %0, %c2_i32 : i32
    %22 = arith.index_cast %arg0 : i32 to index
    %23 = arith.index_cast %21 : i32 to index
    %24 = memref.load %arg2[%22, %23] : memref<2x8xi32, #tpu.memory_space<smem>>
    %c0_i32_11 = arith.constant 0 : i32
    %c63_i32_12 = arith.constant 63 : i32
    %25 = arith.maxsi %c0_i32_11, %24 : i32
    %26 = arith.minsi %c63_i32_12, %25 : i32
    %c2_i32_13 = arith.constant 2 : i32
    %c0_i32_14 = arith.constant 0 : i32
    %27 = tpu.memref_slice %arg4[%26, %c0_i32_14] : memref<64x128xf32, #tpu.memory_space<any>> -> memref<1x128xf32, #tpu.memory_space<any>>
    %c2_i32_15 = arith.constant 2 : i32
    %c0_i32_16 = arith.constant 0 : i32
    %28 = tpu.memref_slice %arg10[%c2_i32_15, %c0_i32_16] : memref<8x128xf32, #tpu.memory_space<vmem>> -> memref<1x128xf32, #tpu.memory_space<vmem>>
    %29 = tpu.memref_slice %arg11[%c2_i32_13] : memref<8x!tpu.dma_semaphore, #tpu.memory_space<semaphore_mem>> -> memref<1x!tpu.dma_semaphore, #tpu.memory_space<semaphore_mem>>
    %30 = tpu.memref_squeeze %29 : memref<1x!tpu.dma_semaphore, #tpu.memory_space<semaphore_mem>> -> memref<!tpu.dma_semaphore, #tpu.memory_space<semaphore_mem>>
    tpu.enqueue_dma source(%27 : memref<1x128xf32, #tpu.memory_space<any>>) target(%28 : memref<1x128xf32, #tpu.memory_space<vmem>>) target_semaphore(%30 : memref<!tpu.dma_semaphore, #tpu.memory_space<semaphore_mem>>)
    %c3_i32 = arith.constant 3 : i32
    %31 = arith.addi %0, %c3_i32 : i32
    %32 = arith.index_cast %arg0 : i32 to index
    %33 = arith.index_cast %31 : i32 to index
    %34 = memref.load %arg2[%32, %33] : memref<2x8xi32, #tpu.memory_space<smem>>
    %c0_i32_17 = arith.constant 0 : i32
    %c63_i32_18 = arith.constant 63 : i32
    %35 = arith.maxsi %c0_i32_17, %34 : i32
    %36 = arith.minsi %c63_i32_18, %35 : i32
    %c3_i32_19 = arith.constant 3 : i32
    %c0_i32_20 = arith.constant 0 : i32
    %37 = tpu.memref_slice %arg4[%36, %c0_i32_20] : memref<64x128xf32, #tpu.memory_space<any>> -> memref<1x128xf32, #tpu.memory_space<any>>
    %c3_i32_21 = arith.constant 3 : i32
    %c0_i32_22 = arith.constant 0 : i32
    %38 = tpu.memref_slice %arg10[%c3_i32_21, %c0_i32_22] : memref<8x128xf32, #tpu.memory_space<vmem>> -> memref<1x128xf32, #tpu.memory_space<vmem>>
    %39 = tpu.memref_slice %arg11[%c3_i32_19] : memref<8x!tpu.dma_semaphore, #tpu.memory_space<semaphore_mem>> -> memref<1x!tpu.dma_semaphore, #tpu.memory_space<semaphore_mem>>
    %40 = tpu.memref_squeeze %39 : memref<1x!tpu.dma_semaphore, #tpu.memory_space<semaphore_mem>> -> memref<!tpu.dma_semaphore, #tpu.memory_space<semaphore_mem>>
    tpu.enqueue_dma source(%37 : memref<1x128xf32, #tpu.memory_space<any>>) target(%38 : memref<1x128xf32, #tpu.memory_space<vmem>>) target_semaphore(%40 : memref<!tpu.dma_semaphore, #tpu.memory_space<semaphore_mem>>)
    %c4_i32 = arith.constant 4 : i32
    %41 = arith.addi %0, %c4_i32 : i32
    %42 = arith.index_cast %arg0 : i32 to index
    %43 = arith.index_cast %41 : i32 to index
    %44 = memref.load %arg2[%42, %43] : memref<2x8xi32, #tpu.memory_space<smem>>
    %c0_i32_23 = arith.constant 0 : i32
    %c63_i32_24 = arith.constant 63 : i32
    %45 = arith.maxsi %c0_i32_23, %44 : i32
    %46 = arith.minsi %c63_i32_24, %45 : i32
    %c4_i32_25 = arith.constant 4 : i32
    %c0_i32_26 = arith.constant 0 : i32
    %47 = tpu.memref_slice %arg4[%46, %c0_i32_26] : memref<64x128xf32, #tpu.memory_space<any>> -> memref<1x128xf32, #tpu.memory_space<any>>
    %c4_i32_27 = arith.constant 4 : i32
    %c0_i32_28 = arith.constant 0 : i32
    %48 = tpu.memref_slice %arg10[%c4_i32_27, %c0_i32_28] : memref<8x128xf32, #tpu.memory_space<vmem>> -> memref<1x128xf32, #tpu.memory_space<vmem>>
    %49 = tpu.memref_slice %arg11[%c4_i32_25] : memref<8x!tpu.dma_semaphore, #tpu.memory_space<semaphore_mem>> -> memref<1x!tpu.dma_semaphore, #tpu.memory_space<semaphore_mem>>
    %50 = tpu.memref_squeeze %49 : memref<1x!tpu.dma_semaphore, #tpu.memory_space<semaphore_mem>> -> memref<!tpu.dma_semaphore, #tpu.memory_space<semaphore_mem>>
    tpu.enqueue_dma source(%47 : memref<1x128xf32, #tpu.memory_space<any>>) target(%48 : memref<1x128xf32, #tpu.memory_space<vmem>>) target_semaphore(%50 : memref<!tpu.dma_semaphore, #tpu.memory_space<semaphore_mem>>)
    %c5_i32 = arith.constant 5 : i32
    %51 = arith.addi %0, %c5_i32 : i32
    %52 = arith.index_cast %arg0 : i32 to index
    %53 = arith.index_cast %51 : i32 to index
    %54 = memref.load %arg2[%52, %53] : memref<2x8xi32, #tpu.memory_space<smem>>
    %c0_i32_29 = arith.constant 0 : i32
    %c63_i32_30 = arith.constant 63 : i32
    %55 = arith.maxsi %c0_i32_29, %54 : i32
    %56 = arith.minsi %c63_i32_30, %55 : i32
    %c5_i32_31 = arith.constant 5 : i32
    %c0_i32_32 = arith.constant 0 : i32
    %57 = tpu.memref_slice %arg4[%56, %c0_i32_32] : memref<64x128xf32, #tpu.memory_space<any>> -> memref<1x128xf32, #tpu.memory_space<any>>
    %c5_i32_33 = arith.constant 5 : i32
    %c0_i32_34 = arith.constant 0 : i32
    %58 = tpu.memref_slice %arg10[%c5_i32_33, %c0_i32_34] : memref<8x128xf32, #tpu.memory_space<vmem>> -> memref<1x128xf32, #tpu.memory_space<vmem>>
    %59 = tpu.memref_slice %arg11[%c5_i32_31] : memref<8x!tpu.dma_semaphore, #tpu.memory_space<semaphore_mem>> -> memref<1x!tpu.dma_semaphore, #tpu.memory_space<semaphore_mem>>
    %60 = tpu.memref_squeeze %59 : memref<1x!tpu.dma_semaphore, #tpu.memory_space<semaphore_mem>> -> memref<!tpu.dma_semaphore, #tpu.memory_space<semaphore_mem>>
    tpu.enqueue_dma source(%57 : memref<1x128xf32, #tpu.memory_space<any>>) target(%58 : memref<1x128xf32, #tpu.memory_space<vmem>>) target_semaphore(%60 : memref<!tpu.dma_semaphore, #tpu.memory_space<semaphore_mem>>)
    %c6_i32 = arith.constant 6 : i32
    %61 = arith.addi %0, %c6_i32 : i32
    %62 = arith.index_cast %arg0 : i32 to index
    %63 = arith.index_cast %61 : i32 to index
    %64 = memref.load %arg2[%62, %63] : memref<2x8xi32, #tpu.memory_space<smem>>
    %c0_i32_35 = arith.constant 0 : i32
    %c63_i32_36 = arith.constant 63 : i32
    %65 = arith.maxsi %c0_i32_35, %64 : i32
    %66 = arith.minsi %c63_i32_36, %65 : i32
    %c6_i32_37 = arith.constant 6 : i32
    %c0_i32_38 = arith.constant 0 : i32
    %67 = tpu.memref_slice %arg4[%66, %c0_i32_38] : memref<64x128xf32, #tpu.memory_space<any>> -> memref<1x128xf32, #tpu.memory_space<any>>
    %c6_i32_39 = arith.constant 6 : i32
    %c0_i32_40 = arith.constant 0 : i32
    %68 = tpu.memref_slice %arg10[%c6_i32_39, %c0_i32_40] : memref<8x128xf32, #tpu.memory_space<vmem>> -> memref<1x128xf32, #tpu.memory_space<vmem>>
    %69 = tpu.memref_slice %arg11[%c6_i32_37] : memref<8x!tpu.dma_semaphore, #tpu.memory_space<semaphore_mem>> -> memref<1x!tpu.dma_semaphore, #tpu.memory_space<semaphore_mem>>
    %70 = tpu.memref_squeeze %69 : memref<1x!tpu.dma_semaphore, #tpu.memory_space<semaphore_mem>> -> memref<!tpu.dma_semaphore, #tpu.memory_space<semaphore_mem>>
    tpu.enqueue_dma source(%67 : memref<1x128xf32, #tpu.memory_space<any>>) target(%68 : memref<1x128xf32, #tpu.memory_space<vmem>>) target_semaphore(%70 : memref<!tpu.dma_semaphore, #tpu.memory_space<semaphore_mem>>)
    %c7_i32 = arith.constant 7 : i32
    %71 = arith.addi %0, %c7_i32 : i32
    %72 = arith.index_cast %arg0 : i32 to index
    %73 = arith.index_cast %71 : i32 to index
    %74 = memref.load %arg2[%72, %73] : memref<2x8xi32, #tpu.memory_space<smem>>
    %c0_i32_41 = arith.constant 0 : i32
    %c63_i32_42 = arith.constant 63 : i32
    %75 = arith.maxsi %c0_i32_41, %74 : i32
    %76 = arith.minsi %c63_i32_42, %75 : i32
    %c7_i32_43 = arith.constant 7 : i32
    %c0_i32_44 = arith.constant 0 : i32
    %77 = tpu.memref_slice %arg4[%76, %c0_i32_44] : memref<64x128xf32, #tpu.memory_space<any>> -> memref<1x128xf32, #tpu.memory_space<any>>
    %c7_i32_45 = arith.constant 7 : i32
    %c0_i32_46 = arith.constant 0 : i32
    %78 = tpu.memref_slice %arg10[%c7_i32_45, %c0_i32_46] : memref<8x128xf32, #tpu.memory_space<vmem>> -> memref<1x128xf32, #tpu.memory_space<vmem>>
    %79 = tpu.memref_slice %arg11[%c7_i32_43] : memref<8x!tpu.dma_semaphore, #tpu.memory_space<semaphore_mem>> -> memref<1x!tpu.dma_semaphore, #tpu.memory_space<semaphore_mem>>
    %80 = tpu.memref_squeeze %79 : memref<1x!tpu.dma_semaphore, #tpu.memory_space<semaphore_mem>> -> memref<!tpu.dma_semaphore, #tpu.memory_space<semaphore_mem>>
    tpu.enqueue_dma source(%77 : memref<1x128xf32, #tpu.memory_space<any>>) target(%78 : memref<1x128xf32, #tpu.memory_space<vmem>>) target_semaphore(%80 : memref<!tpu.dma_semaphore, #tpu.memory_space<semaphore_mem>>)
    %c0 = arith.constant 0 : index
    %c0_47 = arith.constant 0 : index
    %81 = vector.load %arg5[%c0, %c0_47] : memref<8x128xf32, #tpu.memory_space<vmem>>, vector<8x128xf32>
    %c0_48 = arith.constant 0 : index
    %c0_49 = arith.constant 0 : index
    %c0_50 = arith.constant 0 : index
    %82 = vector.load %arg3[%c0_48, %c0_49, %c0_50] : memref<1x8x1xi32, #tpu.memory_space<vmem>>, vector<1x8x1xi32>
    %83 = vector.shape_cast %82 : vector<1x8x1xi32> to vector<8x1xi32>
    %c0_51 = arith.constant 0 : index
    %c0_52 = arith.constant 0 : index
    %84 = vector.load %arg6[%c0_51, %c0_52] : memref<3x128xf32, #tpu.memory_space<vmem>>, vector<1x128xf32>
    %c1 = arith.constant 1 : index
    %c0_53 = arith.constant 0 : index
    %85 = vector.load %arg6[%c1, %c0_53] : memref<3x128xf32, #tpu.memory_space<vmem>>, vector<1x128xf32>
    %c2 = arith.constant 2 : index
    %c0_54 = arith.constant 0 : index
    %86 = vector.load %arg6[%c2, %c0_54] : memref<3x128xf32, #tpu.memory_space<vmem>>, vector<1x128xf32>
    %c0_i32_55 = arith.constant 0 : i32
    %87 = vector.broadcast %c0_i32_55 : i32 to vector<8x1xi32>
    %88 = arith.cmpi eq, %83, %87 : vector<8x1xi32>
    %c1_i32_56 = arith.constant 1 : i32
    %89 = vector.broadcast %c1_i32_56 : i32 to vector<8x1xi32>
    %90 = arith.cmpi eq, %83, %89 : vector<8x1xi32>
    %91 = vector.shape_cast %90 : vector<8x1xi1> to vector<8x1xi1>
    %92 = vector.broadcast %91 : vector<8x1xi1> to vector<8x128xi1>
    %93 = vector.shape_cast %85 : vector<1x128xf32> to vector<1x128xf32>
    %94 = vector.broadcast %93 : vector<1x128xf32> to vector<8x128xf32>
    %95 = vector.shape_cast %86 : vector<1x128xf32> to vector<1x128xf32>
    %96 = vector.broadcast %95 : vector<1x128xf32> to vector<8x128xf32>
    %97 = arith.select %92, %94, %96 : vector<8x128xi1>, vector<8x128xf32>
    %98 = vector.shape_cast %88 : vector<8x1xi1> to vector<8x1xi1>
    %99 = vector.broadcast %98 : vector<8x1xi1> to vector<8x128xi1>
    %100 = vector.shape_cast %84 : vector<1x128xf32> to vector<1x128xf32>
    %101 = vector.broadcast %100 : vector<1x128xf32> to vector<8x128xf32>
    %102 = arith.select %99, %101, %97 : vector<8x128xi1>, vector<8x128xf32>
    %103 = arith.addf %81, %102 : vector<8x128xf32>
    %c0_i32_57 = arith.constant 0 : i32
    %104 = arith.addi %0, %c0_i32_57 : i32
    %105 = arith.index_cast %arg0 : i32 to index
    %106 = arith.index_cast %104 : i32 to index
    %107 = memref.load %arg2[%105, %106] : memref<2x8xi32, #tpu.memory_space<smem>>
    %c0_i32_58 = arith.constant 0 : i32
    %c63_i32_59 = arith.constant 63 : i32
    %108 = arith.maxsi %c0_i32_58, %107 : i32
    %109 = arith.minsi %c63_i32_59, %108 : i32
    %c0_i32_60 = arith.constant 0 : i32
    %c0_i32_61 = arith.constant 0 : i32
    %110 = tpu.memref_slice %arg4[%109, %c0_i32_61] : memref<64x128xf32, #tpu.memory_space<any>> -> memref<1x128xf32, #tpu.memory_space<any>>
    %c0_i32_62 = arith.constant 0 : i32
    %c0_i32_63 = arith.constant 0 : i32
    %111 = tpu.memref_slice %arg10[%c0_i32_62, %c0_i32_63] : memref<8x128xf32, #tpu.memory_space<vmem>> -> memref<1x128xf32, #tpu.memory_space<vmem>>
    %112 = tpu.memref_slice %arg11[%c0_i32_60] : memref<8x!tpu.dma_semaphore, #tpu.memory_space<semaphore_mem>> -> memref<1x!tpu.dma_semaphore, #tpu.memory_space<semaphore_mem>>
    %113 = tpu.memref_squeeze %112 : memref<1x!tpu.dma_semaphore, #tpu.memory_space<semaphore_mem>> -> memref<!tpu.dma_semaphore, #tpu.memory_space<semaphore_mem>>
    tpu.wait_dma2 semaphore(%113 : memref<!tpu.dma_semaphore, #tpu.memory_space<semaphore_mem>>) src(%110 : memref<1x128xf32, #tpu.memory_space<any>>) dst(%111 : memref<1x128xf32, #tpu.memory_space<vmem>>)
    %c1_i32_64 = arith.constant 1 : i32
    %114 = arith.addi %0, %c1_i32_64 : i32
    %115 = arith.index_cast %arg0 : i32 to index
    %116 = arith.index_cast %114 : i32 to index
    %117 = memref.load %arg2[%115, %116] : memref<2x8xi32, #tpu.memory_space<smem>>
    %c0_i32_65 = arith.constant 0 : i32
    %c63_i32_66 = arith.constant 63 : i32
    %118 = arith.maxsi %c0_i32_65, %117 : i32
    %119 = arith.minsi %c63_i32_66, %118 : i32
    %c1_i32_67 = arith.constant 1 : i32
    %c0_i32_68 = arith.constant 0 : i32
    %120 = tpu.memref_slice %arg4[%119, %c0_i32_68] : memref<64x128xf32, #tpu.memory_space<any>> -> memref<1x128xf32, #tpu.memory_space<any>>
    %c1_i32_69 = arith.constant 1 : i32
    %c0_i32_70 = arith.constant 0 : i32
    %121 = tpu.memref_slice %arg10[%c1_i32_69, %c0_i32_70] : memref<8x128xf32, #tpu.memory_space<vmem>> -> memref<1x128xf32, #tpu.memory_space<vmem>>
    %122 = tpu.memref_slice %arg11[%c1_i32_67] : memref<8x!tpu.dma_semaphore, #tpu.memory_space<semaphore_mem>> -> memref<1x!tpu.dma_semaphore, #tpu.memory_space<semaphore_mem>>
    %123 = tpu.memref_squeeze %122 : memref<1x!tpu.dma_semaphore, #tpu.memory_space<semaphore_mem>> -> memref<!tpu.dma_semaphore, #tpu.memory_space<semaphore_mem>>
    tpu.wait_dma2 semaphore(%123 : memref<!tpu.dma_semaphore, #tpu.memory_space<semaphore_mem>>) src(%120 : memref<1x128xf32, #tpu.memory_space<any>>) dst(%121 : memref<1x128xf32, #tpu.memory_space<vmem>>)
    %c2_i32_71 = arith.constant 2 : i32
    %124 = arith.addi %0, %c2_i32_71 : i32
    %125 = arith.index_cast %arg0 : i32 to index
    %126 = arith.index_cast %124 : i32 to index
    %127 = memref.load %arg2[%125, %126] : memref<2x8xi32, #tpu.memory_space<smem>>
    %c0_i32_72 = arith.constant 0 : i32
    %c63_i32_73 = arith.constant 63 : i32
    %128 = arith.maxsi %c0_i32_72, %127 : i32
    %129 = arith.minsi %c63_i32_73, %128 : i32
    %c2_i32_74 = arith.constant 2 : i32
    %c0_i32_75 = arith.constant 0 : i32
    %130 = tpu.memref_slice %arg4[%129, %c0_i32_75] : memref<64x128xf32, #tpu.memory_space<any>> -> memref<1x128xf32, #tpu.memory_space<any>>
    %c2_i32_76 = arith.constant 2 : i32
    %c0_i32_77 = arith.constant 0 : i32
    %131 = tpu.memref_slice %arg10[%c2_i32_76, %c0_i32_77] : memref<8x128xf32, #tpu.memory_space<vmem>> -> memref<1x128xf32, #tpu.memory_space<vmem>>
    %132 = tpu.memref_slice %arg11[%c2_i32_74] : memref<8x!tpu.dma_semaphore, #tpu.memory_space<semaphore_mem>> -> memref<1x!tpu.dma_semaphore, #tpu.memory_space<semaphore_mem>>
    %133 = tpu.memref_squeeze %132 : memref<1x!tpu.dma_semaphore, #tpu.memory_space<semaphore_mem>> -> memref<!tpu.dma_semaphore, #tpu.memory_space<semaphore_mem>>
    tpu.wait_dma2 semaphore(%133 : memref<!tpu.dma_semaphore, #tpu.memory_space<semaphore_mem>>) src(%130 : memref<1x128xf32, #tpu.memory_space<any>>) dst(%131 : memref<1x128xf32, #tpu.memory_space<vmem>>)
    %c3_i32_78 = arith.constant 3 : i32
    %134 = arith.addi %0, %c3_i32_78 : i32
    %135 = arith.index_cast %arg0 : i32 to index
    %136 = arith.index_cast %134 : i32 to index
    %137 = memref.load %arg2[%135, %136] : memref<2x8xi32, #tpu.memory_space<smem>>
    %c0_i32_79 = arith.constant 0 : i32
    %c63_i32_80 = arith.constant 63 : i32
    %138 = arith.maxsi %c0_i32_79, %137 : i32
    %139 = arith.minsi %c63_i32_80, %138 : i32
    %c3_i32_81 = arith.constant 3 : i32
    %c0_i32_82 = arith.constant 0 : i32
    %140 = tpu.memref_slice %arg4[%139, %c0_i32_82] : memref<64x128xf32, #tpu.memory_space<any>> -> memref<1x128xf32, #tpu.memory_space<any>>
    %c3_i32_83 = arith.constant 3 : i32
    %c0_i32_84 = arith.constant 0 : i32
    %141 = tpu.memref_slice %arg10[%c3_i32_83, %c0_i32_84] : memref<8x128xf32, #tpu.memory_space<vmem>> -> memref<1x128xf32, #tpu.memory_space<vmem>>
    %142 = tpu.memref_slice %arg11[%c3_i32_81] : memref<8x!tpu.dma_semaphore, #tpu.memory_space<semaphore_mem>> -> memref<1x!tpu.dma_semaphore, #tpu.memory_space<semaphore_mem>>
    %143 = tpu.memref_squeeze %142 : memref<1x!tpu.dma_semaphore, #tpu.memory_space<semaphore_mem>> -> memref<!tpu.dma_semaphore, #tpu.memory_space<semaphore_mem>>
    tpu.wait_dma2 semaphore(%143 : memref<!tpu.dma_semaphore, #tpu.memory_space<semaphore_mem>>) src(%140 : memref<1x128xf32, #tpu.memory_space<any>>) dst(%141 : memref<1x128xf32, #tpu.memory_space<vmem>>)
    %c4_i32_85 = arith.constant 4 : i32
    %144 = arith.addi %0, %c4_i32_85 : i32
    %145 = arith.index_cast %arg0 : i32 to index
    %146 = arith.index_cast %144 : i32 to index
    %147 = memref.load %arg2[%145, %146] : memref<2x8xi32, #tpu.memory_space<smem>>
    %c0_i32_86 = arith.constant 0 : i32
    %c63_i32_87 = arith.constant 63 : i32
    %148 = arith.maxsi %c0_i32_86, %147 : i32
    %149 = arith.minsi %c63_i32_87, %148 : i32
    %c4_i32_88 = arith.constant 4 : i32
    %c0_i32_89 = arith.constant 0 : i32
    %150 = tpu.memref_slice %arg4[%149, %c0_i32_89] : memref<64x128xf32, #tpu.memory_space<any>> -> memref<1x128xf32, #tpu.memory_space<any>>
    %c4_i32_90 = arith.constant 4 : i32
    %c0_i32_91 = arith.constant 0 : i32
    %151 = tpu.memref_slice %arg10[%c4_i32_90, %c0_i32_91] : memref<8x128xf32, #tpu.memory_space<vmem>> -> memref<1x128xf32, #tpu.memory_space<vmem>>
    %152 = tpu.memref_slice %arg11[%c4_i32_88] : memref<8x!tpu.dma_semaphore, #tpu.memory_space<semaphore_mem>> -> memref<1x!tpu.dma_semaphore, #tpu.memory_space<semaphore_mem>>
    %153 = tpu.memref_squeeze %152 : memref<1x!tpu.dma_semaphore, #tpu.memory_space<semaphore_mem>> -> memref<!tpu.dma_semaphore, #tpu.memory_space<semaphore_mem>>
    tpu.wait_dma2 semaphore(%153 : memref<!tpu.dma_semaphore, #tpu.memory_space<semaphore_mem>>) src(%150 : memref<1x128xf32, #tpu.memory_space<any>>) dst(%151 : memref<1x128xf32, #tpu.memory_space<vmem>>)
    %c5_i32_92 = arith.constant 5 : i32
    %154 = arith.addi %0, %c5_i32_92 : i32
    %155 = arith.index_cast %arg0 : i32 to index
    %156 = arith.index_cast %154 : i32 to index
    %157 = memref.load %arg2[%155, %156] : memref<2x8xi32, #tpu.memory_space<smem>>
    %c0_i32_93 = arith.constant 0 : i32
    %c63_i32_94 = arith.constant 63 : i32
    %158 = arith.maxsi %c0_i32_93, %157 : i32
    %159 = arith.minsi %c63_i32_94, %158 : i32
    %c5_i32_95 = arith.constant 5 : i32
    %c0_i32_96 = arith.constant 0 : i32
    %160 = tpu.memref_slice %arg4[%159, %c0_i32_96] : memref<64x128xf32, #tpu.memory_space<any>> -> memref<1x128xf32, #tpu.memory_space<any>>
    %c5_i32_97 = arith.constant 5 : i32
    %c0_i32_98 = arith.constant 0 : i32
    %161 = tpu.memref_slice %arg10[%c5_i32_97, %c0_i32_98] : memref<8x128xf32, #tpu.memory_space<vmem>> -> memref<1x128xf32, #tpu.memory_space<vmem>>
    %162 = tpu.memref_slice %arg11[%c5_i32_95] : memref<8x!tpu.dma_semaphore, #tpu.memory_space<semaphore_mem>> -> memref<1x!tpu.dma_semaphore, #tpu.memory_space<semaphore_mem>>
    %163 = tpu.memref_squeeze %162 : memref<1x!tpu.dma_semaphore, #tpu.memory_space<semaphore_mem>> -> memref<!tpu.dma_semaphore, #tpu.memory_space<semaphore_mem>>
    tpu.wait_dma2 semaphore(%163 : memref<!tpu.dma_semaphore, #tpu.memory_space<semaphore_mem>>) src(%160 : memref<1x128xf32, #tpu.memory_space<any>>) dst(%161 : memref<1x128xf32, #tpu.memory_space<vmem>>)
    %c6_i32_99 = arith.constant 6 : i32
    %164 = arith.addi %0, %c6_i32_99 : i32
    %165 = arith.index_cast %arg0 : i32 to index
    %166 = arith.index_cast %164 : i32 to index
    %167 = memref.load %arg2[%165, %166] : memref<2x8xi32, #tpu.memory_space<smem>>
    %c0_i32_100 = arith.constant 0 : i32
    %c63_i32_101 = arith.constant 63 : i32
    %168 = arith.maxsi %c0_i32_100, %167 : i32
    %169 = arith.minsi %c63_i32_101, %168 : i32
    %c6_i32_102 = arith.constant 6 : i32
    %c0_i32_103 = arith.constant 0 : i32
    %170 = tpu.memref_slice %arg4[%169, %c0_i32_103] : memref<64x128xf32, #tpu.memory_space<any>> -> memref<1x128xf32, #tpu.memory_space<any>>
    %c6_i32_104 = arith.constant 6 : i32
    %c0_i32_105 = arith.constant 0 : i32
    %171 = tpu.memref_slice %arg10[%c6_i32_104, %c0_i32_105] : memref<8x128xf32, #tpu.memory_space<vmem>> -> memref<1x128xf32, #tpu.memory_space<vmem>>
    %172 = tpu.memref_slice %arg11[%c6_i32_102] : memref<8x!tpu.dma_semaphore, #tpu.memory_space<semaphore_mem>> -> memref<1x!tpu.dma_semaphore, #tpu.memory_space<semaphore_mem>>
    %173 = tpu.memref_squeeze %172 : memref<1x!tpu.dma_semaphore, #tpu.memory_space<semaphore_mem>> -> memref<!tpu.dma_semaphore, #tpu.memory_space<semaphore_mem>>
    tpu.wait_dma2 semaphore(%173 : memref<!tpu.dma_semaphore, #tpu.memory_space<semaphore_mem>>) src(%170 : memref<1x128xf32, #tpu.memory_space<any>>) dst(%171 : memref<1x128xf32, #tpu.memory_space<vmem>>)
    %c7_i32_106 = arith.constant 7 : i32
    %174 = arith.addi %0, %c7_i32_106 : i32
    %175 = arith.index_cast %arg0 : i32 to index
    %176 = arith.index_cast %174 : i32 to index
    %177 = memref.load %arg2[%175, %176] : memref<2x8xi32, #tpu.memory_space<smem>>
    %c0_i32_107 = arith.constant 0 : i32
    %c63_i32_108 = arith.constant 63 : i32
    %178 = arith.maxsi %c0_i32_107, %177 : i32
    %179 = arith.minsi %c63_i32_108, %178 : i32
    %c7_i32_109 = arith.constant 7 : i32
    %c0_i32_110 = arith.constant 0 : i32
    %180 = tpu.memref_slice %arg4[%179, %c0_i32_110] : memref<64x128xf32, #tpu.memory_space<any>> -> memref<1x128xf32, #tpu.memory_space<any>>
    %c7_i32_111 = arith.constant 7 : i32
    %c0_i32_112 = arith.constant 0 : i32
    %181 = tpu.memref_slice %arg10[%c7_i32_111, %c0_i32_112] : memref<8x128xf32, #tpu.memory_space<vmem>> -> memref<1x128xf32, #tpu.memory_space<vmem>>
    %182 = tpu.memref_slice %arg11[%c7_i32_109] : memref<8x!tpu.dma_semaphore, #tpu.memory_space<semaphore_mem>> -> memref<1x!tpu.dma_semaphore, #tpu.memory_space<semaphore_mem>>
    %183 = tpu.memref_squeeze %182 : memref<1x!tpu.dma_semaphore, #tpu.memory_space<semaphore_mem>> -> memref<!tpu.dma_semaphore, #tpu.memory_space<semaphore_mem>>
    tpu.wait_dma2 semaphore(%183 : memref<!tpu.dma_semaphore, #tpu.memory_space<semaphore_mem>>) src(%180 : memref<1x128xf32, #tpu.memory_space<any>>) dst(%181 : memref<1x128xf32, #tpu.memory_space<vmem>>)
    %c0_113 = arith.constant 0 : index
    %c0_114 = arith.constant 0 : index
    %184 = vector.load %arg10[%c0_113, %c0_114] : memref<8x128xf32, #tpu.memory_space<vmem>>, vector<8x128xf32>
    %185 = arith.addf %184, %103 : vector<8x128xf32>
    %cst = arith.constant dense<0.000000e+00> : vector<8xf32>
    %186 = vector.multi_reduction <add>, %185, %cst [1] : vector<8x128xf32> to vector<8xf32>
    %187 = vector.shape_cast %186 : vector<8xf32> to vector<8x1xf32>
    %cst_115 = arith.constant 1.280000e+02 : f32
    %188 = vector.broadcast %cst_115 : f32 to vector<8x1xf32>
    %189 = arith.divf %187, %188 : vector<8x1xf32>
    %190 = vector.broadcast %189 : vector<8x1xf32> to vector<8x128xf32>
    %191 = arith.subf %185, %190 : vector<8x128xf32>
    %192 = arith.mulf %191, %191 : vector<8x128xf32>
    %cst_116 = arith.constant dense<0.000000e+00> : vector<8xf32>
    %193 = vector.multi_reduction <add>, %192, %cst_116 [1] : vector<8x128xf32> to vector<8xf32>
    %194 = vector.shape_cast %193 : vector<8xf32> to vector<8x1xf32>
    %cst_117 = arith.constant 1.280000e+02 : f32
    %195 = vector.broadcast %cst_117 : f32 to vector<8x1xf32>
    %196 = arith.divf %194, %195 : vector<8x1xf32>
    %197 = vector.broadcast %189 : vector<8x1xf32> to vector<8x128xf32>
    %198 = arith.subf %185, %197 : vector<8x128xf32>
    %cst_118 = arith.constant 9.99999997E-7 : f32
    %199 = vector.broadcast %cst_118 : f32 to vector<8x1xf32>
    %200 = arith.addf %196, %199 : vector<8x1xf32>
    %201 = math.rsqrt %200 : vector<8x1xf32>
    %202 = vector.broadcast %201 : vector<8x1xf32> to vector<8x128xf32>
    %203 = arith.mulf %198, %202 : vector<8x128xf32>
    %c0_119 = arith.constant 0 : index
    %c0_120 = arith.constant 0 : index
    %204 = vector.load %arg7[%c0_119, %c0_120] : memref<1x128xf32, #tpu.memory_space<vmem>>, vector<1x128xf32>
    %205 = vector.broadcast %204 : vector<1x128xf32> to vector<8x128xf32>
    %206 = arith.mulf %203, %205 : vector<8x128xf32>
    %c0_121 = arith.constant 0 : index
    %c0_122 = arith.constant 0 : index
    %207 = vector.load %arg8[%c0_121, %c0_122] : memref<1x128xf32, #tpu.memory_space<vmem>>, vector<1x128xf32>
    %208 = vector.broadcast %207 : vector<1x128xf32> to vector<8x128xf32>
    %209 = arith.addf %206, %208 : vector<8x128xf32>
    %c0_123 = arith.constant 0 : index
    %c0_124 = arith.constant 0 : index
    %c0_125 = arith.constant 0 : index
    %210 = vector.load %arg9[%c0_123, %c0_124, %c0_125] : memref<1x8x128xf32, #tpu.memory_space<vmem>>, vector<1x8x128xf32>
    %211 = vector.shape_cast %210 : vector<1x8x128xf32> to vector<8x128xf32>
    %212 = vector.shape_cast %209 : vector<8x128xf32> to vector<1x8x128xf32>
    tpu.vector_store %arg9[%c0_123, %c0_124, %c0_125], %212 {strides = array<i32>} : memref<1x8x128xf32, #tpu.memory_space<vmem>>, vector<1x8x128xf32>,
    return
  }
  func.func @transform_0(%arg0: i32, %arg1: i32, %arg2: memref<2x8xi32, #tpu.memory_space<smem>>) -> (i32, i32, i32) {
    %c0_i32 = arith.constant 0 : i32
    %c0_i32_0 = arith.constant 0 : i32
    return %arg0, %arg1, %c0_i32 : i32, i32, i32
  }
  func.func @transform_2(%arg0: i32, %arg1: i32, %arg2: memref<2x8xi32, #tpu.memory_space<smem>>) -> (i32, i32) {
    %c0_i32 = arith.constant 0 : i32
    %c0_i32_0 = arith.constant 0 : i32
    return %arg1, %c0_i32 : i32, i32
  }
  func.func @transform_3(%arg0: i32, %arg1: i32, %arg2: memref<2x8xi32, #tpu.memory_space<smem>>) -> (i32, i32) {
    %c0_i32 = arith.constant 0 : i32
    %c0_i32_0 = arith.constant 0 : i32
    %c0_i32_1 = arith.constant 0 : i32
    return %c0_i32, %c0_i32_0 : i32, i32
  }
  func.func @transform_4(%arg0: i32, %arg1: i32, %arg2: memref<2x8xi32, #tpu.memory_space<smem>>) -> (i32, i32) {
    %c0_i32 = arith.constant 0 : i32
    %c0_i32_0 = arith.constant 0 : i32
    %c0_i32_1 = arith.constant 0 : i32
    return %c0_i32, %c0_i32_0 : i32, i32
  }
  func.func @transform_5(%arg0: i32, %arg1: i32, %arg2: memref<2x8xi32, #tpu.memory_space<smem>>) -> (i32, i32) {
    %c0_i32 = arith.constant 0 : i32
    %c0_i32_0 = arith.constant 0 : i32
    %c0_i32_1 = arith.constant 0 : i32
    return %c0_i32, %c0_i32_0 : i32, i32
  }
  func.func @transform_6(%arg0: i32, %arg1: i32, %arg2: memref<2x8xi32, #tpu.memory_space<smem>>) -> (i32, i32, i32) {
    %c0_i32 = arith.constant 0 : i32
    %c0_i32_0 = arith.constant 0 : i32
    return %arg0, %arg1, %c0_i32 : i32, i32, i32
  }
}

</mosaic_0001>

<bundles_post_ra>
// kernel: tpu_custom_call.1
= control target key start
LH: loop header
LB: loop body
LE: loop exit
PB: predicated region body
PF: predicated region fallthrough
CT: control target
= control target key end

     0   :  { %s1575_s0 = inlined_call_operand.vmem [shape: s32[2,8], index: 0, kind: input, shape index: {}]   ;;  %s1576_s1 = inlined_call_operand.vmem [shape: s32[2,8,1], index: 1, kind: input, shape index: {}]   ;;  %s1577_s2 = inlined_call_operand.hbm [shape: f32[64,128], index: 2, kind: input, shape index: {}]   ;;  %s1578_s3 = inlined_call_operand.vmem [shape: f32[16,128], index: 3, kind: input, shape index: {}]   ;;  %s1579_s4 = inlined_call_operand.vmem [shape: f32[3,128], index: 4, kind: input, shape index: {}]   ;;  %s1580_s5 = inlined_call_operand.vmem [shape: f32[1,128], index: 5, kind: input, shape index: {}]   ;;  %s1581_s6 = inlined_call_operand.vmem [shape: f32[1,128], index: 6, kind: input, shape index: {}]   ;;  %s1582_s7 = inlined_call_operand.hbm [shape: f32[2,8,128], index: 7, kind: output, shape index: {}]  }
   0x1   :  { %1589 = sst [smem:[#allocation41_spill]] %s1576_s1  ;;  %s12_s26 = sshll.u32 %s1575_s0, 4  ;;  %s13_s26 = int_to_ptr.vmem [resolvable:$true] %s12_s26 }
   0x2   :  { %s917_s27 = scalar_lea.vmem %s13_s26, 32  ;;  %p922_p1 = scmp.lt.s32.totalorder %s13_s26, %s13_s26 }
   0x3   :  { %p918_p0 = scmp.ne.s32.totalorder %s13_s26, %s917_s27  ;;  %p923_p2 = scmp.lt.s32.totalorder %s917_s27, %s917_s27 }
   0x5   :  { %p924_p3 = por %p923_p2, %p922_p1 }
   0x7   :  { %p925_p4 = pnand %p924_p3, %p918_p0 }
   0x9   :  { %928 = shalt.err (!%p925_p4)  }
   0xa   :  { %s1219_s28 = smov [#allocation5]  }
   0xb   :  { %15 = dma.vmem_to_smem %s13_s26, 32, %s1219_s28, [#allocation4] }
   0xc   :  { %1173 = dma.done.wait [#allocation4], 32 }
   0xd   :  { %1174 = vsyncadd [#allocation4], 4294967264 }
   0xe   :  { %17 = sfence }
   0xf   :  { %18 = vsyncpa [#allocation7], 0 }
  0x10   :  { %20 = vsyncpa [#allocation7 + $0x1], 0  ;;  %s1273_s29 = smov 0   ;;  %s1275_s30 = smov 0  }
  0x11   :  { %s1277_s0 = smov 0   ;;  %s1279_s8 = smov 0  }
  0x12   :  { %s1281_s9 = smov 0   ;;  %s1283_s10 = smov 0  }
  0x13 LB: > { %1590 = sst [smem:[#allocation36_spill]] %s1205_s0  ;;  %s752_s11 = sadd.s32 4294967295, %s1217_s10   ;;  %s1217_s10 = sphi %s1283_s10, %s26_s10   ;;  %s1213_s9 = sphi %s1281_s9, %s1612_s9   ;;  %s1209_s8 = sphi %s1279_s8, %s1611_s8   ;;  %s1205_s0 = sphi %s1277_s0, %s1610_s0   ;;  %s1201_s30 = sphi %s1275_s30, %s1614_s30   ;;  %s1197_s29 = sphi %s1273_s29, %s1613_s29  }
  0x14   : > { %1591 = sst [smem:[#allocation37_spill]] %s1213_s9  ;;  %s753_s12 = sadd.s32 4294967294, %s1217_s10  }
  0x15   : > { %s38_s13 = sadd.s32 1, %s1213_s9  ;;  %s164_s14 = sadd.s32 1, %s1205_s0 }
  0x16   : > { %p40_p5 = scmp.ge.s32.totalorder %s38_s13, 2  ;;  %p174_p6 = scmp.ne.s32.totalorder %s1205_s0, %s1201_s30 }
  0x17   : > { %p175_p7 = scmp.eq.s32.totalorder %s752_s11, 1  ;;  %p180_p8 = scmp.ne.s32.totalorder %s1201_s30, %s1197_s29 }
  0x18   : > { %s1616_s13 = smov (%p40_p5, %s38_s13), 0  ;;  %p181_p10 = scmp.eq.s32.totalorder %s753_s12, 1 }
  0x19   : > { %1592 = sst [smem:[#allocation38_spill]] %s1616_s13  ;;  %p1311_p9 = por %p175_p7, %p174_p6 }
  0x1a   : > { %s159_s16 = ssub.s32 %s1213_s9, %s1616_s13  ;;  %p757_p11 = scmp.ge.s32.totalorder %s1217_s10, 1 }
  0x1b   : > { %s1593_s15 = scalar_select %p1311_p9, 1, 0 }
  0x1c   : > { %p162_p12 = scmp.eq.s32.totalorder %s159_s16, 0  ;;  %p1318_p13 = por %p181_p10, %p180_p8 }
  0x1d   : > { %p225_p0 = scmp.lt.s32.totalorder %s1217_s10, 3 }
  0x1e   : > { %s1594_s17 = scalar_select %p1318_p13, 1, 0 }
  0x1f   : > { %s1324_s18 = scalar_select %p162_p12, %s1205_s0, %s164_s14  }
  0x20   : > { %1595 = sst [smem:[#allocation39_spill]] %s1594_s17  ;;  %p226_p1 = pnand %p757_p11, %p225_p0 }
  0x21   : > { %1596 = sst [smem:[#allocation40_spill]] %s1324_s18  ;;  %p259_p2 = scmp.lt.s32.totalorder (!%p226_p1), %s1209_s8, 1  ;;  %v1220_v0 = vmov (!%p226_p1), 0  }
  0x22   : > { %229 = sbr.rel (%p226_p1) target bundleno = 596 (0x254), region = 40  ;;  %s1583_s19 = sand.u32 (!%p226_p1), 1, %s1201_s30   ;;  %914 = vset.pattern.permute.xlu0 (!%p226_p1), %v1220_v0 }
  0x23   : > { %s1329_s20 = sshll.u32 (!%p226_p1), %s1583_s19, 3  ;;  %s1331_s21 = sshll.u32 (!%p226_p1), %s1209_s8, 7 }
  0x24   : > { %s278_s22 = sld [smem:[#allocation5 + %s1331_s21]] (!%p226_p1)  ;;  %s1221_s27 = smov (!%p226_p1), [#allocation2]  }
  0x25   : > { %s1597_s1 = sld [smem:[#allocation41_spill]] (!%p226_p1)  ;;  %s292_s28 = sshll.u32 (!%p226_p1), %s1221_s27, 4  ;;  %s1337_s28 = int_to_ptr.vmem [resolvable:$true] %s292_s28 }
  0x26   : > { %s303_s11 = sadd.s32 (!%p226_p1), 1, %s1331_s21  ;;  %s1222_s14 = smov (!%p226_p1), [#allocation2 + $0x1]  }
  0x27   : > { %s1340_s12 = sld [smem:[#allocation5 + %s303_s11]] (!%p226_p1)  ;;  %s331_s16 = sadd.s32 (!%p226_p1), 2, %s1331_s21 }
  0x28   : > { %s1357_s9 = scalar_lea.hbm (!%p226_p1), %s1577_s2, 1024 }
  0x29   : > { %s1618_s8 = smov (!%p259_p2, %s1209_s8), 1 }
  0x2a   : > { %s759_s23 = sshll.u32 %s1618_s8, 3  ;;  %s320_s8 = sshll.u32 %s1222_s14, 4  ;;  %s1343_s8 = int_to_ptr.vmem [resolvable:$true] %s320_s8 }
  0x2b   : > { %s265_s26 = scalar_lea.vmem %s1597_s1, %s759_s23  ;;  %p279_p3 = scmp.gt.s32.totalorder %s278_s22, 0 }
  0x2c   : > { %v493_v1 = vld [vmem:[%s265_s26] sm:$0xff]  ;;  %p761_p4 = scmp.lt.s32.totalorder %s278_s22, 63  ;;  %s1345_s23 = sld [smem:[#allocation5 + %s331_s16]] }
  0x2d   : > { %vm498_vm0 = vcmp.eq.s32.totalorder %v493_v1, 1  ;;  %vm497_vm1 = vcmp.eq.s32.totalorder %v493_v1, 0  ;;  %s1620_s22 = smov (!%p279_p3, %s278_s22), 0  ;;  %s1223_s26 = smov [#allocation2 + $0x2]  }
  0x2e   : > { %v499_v2 = vsel %vm498_vm0, 1, %v1220_v0  ;;  %v513_v3 = vsel %vm497_vm1, 1, %v1220_v0  ;;  %s1622_s22 = smov (!%p761_p4, %s1620_s22), 63  ;;  %s348_s27 = sshll.u32 %s1223_s26, 4  ;;  %s1381_s27 = int_to_ptr.vmem [resolvable:$true] %s348_s27 }
  0x2f   : > { %501 = vperm.xlu0 %914, %v499_v2   ;;  %s766_s25 = sshll.u32 %s1622_s22, 4 }
  0x30   : > { %s284_s19 = scalar_lea.hbm %s1577_s2, %s766_s25 }
  0x31   : > { %s929_s1 = scalar_lea.hbm %s284_s19, 16  ;;  %p932_p10 = scmp.lt.u32.totalorder %s284_s19, %s1577_s2 }
  0x32   : > { %p930_p8 = scmp.ne.s32.totalorder %s284_s19, %s929_s1  ;;  %p933_p11 = scmp.lt.u32.totalorder %s1357_s9, %s929_s1 }
  0x33   : > { %515 = vperm.xlu0 %914, %v513_v3   ;;  %p935_p0 = scmp.lt.u32.totalorder %s929_s1, %s284_s19 }
  0x34   : > { %p934_p12 = por %p933_p11, %p932_p10 }
  0x36   : > { %p936_p1 = por %p935_p0, %p934_p12 }
  0x38   : > { %p937_p2 = pnand %p936_p1, %p930_p8 }
  0x3a   : > { %940 = shalt.err (!%p937_p2)  }
  0x3b   : > { %s941_s22 = scalar_lea.vmem %s1337_s28, 16  ;;  %s1366_s13 = scalar_lea.vmem %s1337_s28, 128 }
  0x3c   : > { %p942_p3 = scmp.ne.s32.totalorder %s1337_s28, %s941_s22  ;;  %p946_p4 = scmp.lt.s32.totalorder %s1337_s28, %s1337_s28 }
  0x3d   : > { %p947_p6 = scmp.lt.s32.totalorder %s1366_s13, %s941_s22 }
  0x3f   : > { %p948_p7 = por %p947_p6, %p946_p4 }
  0x41   : > { %p949_p5 = pnand %p948_p7, %p942_p3 }
  0x43   : > { %952 = shalt.err (!%p949_p5)  }
  0x44   : > { %295 = dma.hbm_to_vmem [thread:$0]  %s284_s19, 16, %s1337_s28, [#allocation3] }
  0x45   : > { %p1598_p8 = scmp.gt.s32.totalorder %s1340_s12, 0  ;;  %p1599_p10 = scmp.gt.s32.totalorder %s1345_s23, 0 }
  0x46   : > { %p1600_p11 = scmp.lt.s32.totalorder %s1340_s12, 63  ;;  %s1601_s25 = sadd.s32 3, %s1331_s21 }
  0x47   : > { %s306_s1 = scalar_select %p1598_p8, %s1340_s12, 0 }
  0x48   : > { %s334_s18 = scalar_select %p1599_p10, %s1345_s23, 0 }
  0x49   : > { %s1624_s1 = smov (!%p1600_p11, %s306_s1), 63  ;;  %s1385_s26 = sld [smem:[#allocation5 + %s1601_s25]] }
  0x4a   : > { %s773_s24 = sshll.u32 %s1624_s1, 4 }
  0x4b   : > { %s310_s16 = scalar_lea.hbm %s1577_s2, %s773_s24 }
  0x4c   : > { %s953_s22 = scalar_lea.hbm %s310_s16, 16  ;;  %p956_p6 = scmp.lt.u32.totalorder %s310_s16, %s1577_s2 }
  0x4d   : > { %p954_p5 = scmp.ne.s32.totalorder %s310_s16, %s953_s22  ;;  %p957_p7 = scmp.lt.u32.totalorder %s1357_s9, %s953_s22 }
  0x4e   : > { %p959_p1 = scmp.lt.u32.totalorder %s953_s22, %s310_s16 }
  0x4f   : > { %p958_p0 = por %p957_p7, %p956_p6 }
  0x51   : > { %p960_p2 = por %p959_p1, %p958_p0 }
  0x53   : > { %p961_p3 = pnand %p960_p2, %p954_p5 }
  0x55   : > { %964 = shalt.err (!%p961_p3)  }
  0x56   : > { %s965_s12 = scalar_lea.vmem %s1343_s8, 16  ;;  %p970_p8 = scmp.lt.s32.totalorder %s1343_s8, %s1337_s28 }
  0x57   : > { %p966_p4 = scmp.ne.s32.totalorder %s1343_s8, %s965_s12  ;;  %p971_p10 = scmp.lt.s32.totalorder %s1366_s13, %s965_s12 }
  0x59   : > { %p972_p11 = por %p971_p10, %p970_p8 }
  0x5b   : > { %p973_p12 = pnand %p972_p11, %p966_p4 }
  0x5d   : > { %976 = shalt.err (!%p973_p12)  }
  0x5e   : > { %323 = dma.hbm_to_vmem [thread:$0]  %s310_s16, 16, %s1343_s8, [#allocation3 + $0x1] }
  0x5f   : > { %p1602_p5 = scmp.lt.s32.totalorder %s1345_s23, 63  ;;  %s1224_s0 = smov [#allocation2 + $0x3]  }
  0x60   : > { %s376_s1 = sshll.u32 %s1224_s0, 4  ;;  %s387_s24 = sadd.s32 4, %s1331_s21  ;;  %s1403_s1 = int_to_ptr.vmem [resolvable:$true] %s376_s1 }
  0x61   : > { %s1626_s18 = smov (!%p1602_p5, %s334_s18), 63 }
  0x62   : > { %s780_s25 = sshll.u32 %s1626_s18, 4 }
  0x63   : > { %s338_s22 = scalar_lea.hbm %s1577_s2, %s780_s25 }
  0x64   : > { %s977_s19 = scalar_lea.hbm %s338_s22, 16  ;;  %p980_p7 = scmp.lt.u32.totalorder %s338_s22, %s1577_s2 }
  0x65   : > { %p978_p12 = scmp.ne.s32.totalorder %s338_s22, %s977_s19  ;;  %p981_p0 = scmp.lt.u32.totalorder %s1357_s9, %s977_s19 }
  0x66   : > { %p983_p2 = scmp.lt.u32.totalorder %s977_s19, %s338_s22 }
  0x67   : > { %p982_p1 = por %p981_p0, %p980_p7 }
  0x69   : > { %p984_p3 = por %p983_p2, %p982_p1 }
  0x6b   : > { %p985_p4 = pnand %p984_p3, %p978_p12 }
  0x6d   : > { %988 = shalt.err (!%p985_p4)  }
  0x6e   : > { %s989_s8 = scalar_lea.vmem %s1381_s27, 16  ;;  %p994_p10 = scmp.lt.s32.totalorder %s1381_s27, %s1337_s28 }
  0x6f   : > { %p990_p8 = scmp.ne.s32.totalorder %s1381_s27, %s989_s8  ;;  %p995_p11 = scmp.lt.s32.totalorder %s1366_s13, %s989_s8 }
  0x71   : > { %p996_p5 = por %p995_p11, %p994_p10 }
  0x73   : > { %p997_p6 = pnand %p996_p5, %p990_p8 }
  0x75   : > { %1000 = shalt.err (!%p997_p6)  }
  0x76   : > { %351 = dma.hbm_to_vmem [thread:$0]  %s338_s22, 16, %s1381_s27, [#allocation3 + $0x2] }
  0x77   : > { %p1603_p12 = scmp.gt.s32.totalorder %s1385_s26, 0  ;;  %p782_p7 = scmp.lt.s32.totalorder %s1385_s26, 63 }
  0x78   : > { %s1423_s23 = sld [smem:[#allocation5 + %s387_s24]]  ;;  %s415_s18 = sadd.s32 5, %s1331_s21 }
  0x79   : > { %s362_s17 = scalar_select %p1603_p12, %s1385_s26, 0 }
  0x7a   : > { %s1225_s16 = smov [#allocation2 + $0x4]   ;;  %s1426_s25 = sld [smem:[#allocation5 + %s415_s18]] }
  0x7b   : > { %s1628_s17 = smov (!%p782_p7, %s362_s17), 63  ;;  %s404_s0 = sshll.u32 %s1225_s16, 4  ;;  %s1431_s0 = int_to_ptr.vmem [resolvable:$true] %s404_s0 }
  0x7c   : > { %s787_s11 = sshll.u32 %s1628_s17, 4 }
  0x7d   : > { %s366_s12 = scalar_lea.hbm %s1577_s2, %s787_s11 }
  0x7e   : > { %s1001_s8 = scalar_lea.hbm %s366_s12, 16  ;;  %p1004_p0 = scmp.lt.u32.totalorder %s366_s12, %s1577_s2 }
  0x7f   : > { %p1002_p6 = scmp.ne.s32.totalorder %s366_s12, %s1001_s8  ;;  %p1005_p1 = scmp.lt.u32.totalorder %s1357_s9, %s1001_s8 }
  0x80   : > { %p1007_p3 = scmp.lt.u32.totalorder %s1001_s8, %s366_s12 }
  0x81   : > { %p1006_p2 = por %p1005_p1, %p1004_p0 }
  0x83   : > { %p1008_p4 = por %p1007_p3, %p1006_p2 }
  0x85   : > { %p1009_p8 = pnand %p1008_p4, %p1002_p6 }
  0x87   : > { %1012 = shalt.err (!%p1009_p8)  }
  0x88   : > { %s1013_s26 = scalar_lea.vmem %s1403_s1, 16  ;;  %p1018_p11 = scmp.lt.s32.totalorder %s1403_s1, %s1337_s28 }
  0x89   : > { %p1014_p10 = scmp.ne.s32.totalorder %s1403_s1, %s1013_s26  ;;  %p1019_p5 = scmp.lt.s32.totalorder %s1366_s13, %s1013_s26 }
  0x8b   : > { %p1020_p12 = por %p1019_p5, %p1018_p11 }
  0x8d   : > { %p1021_p7 = pnand %p1020_p12, %p1014_p10 }
  0x8f   : > { %1024 = shalt.err (!%p1021_p7)  }
  0x90   : > { %379 = dma.hbm_to_vmem [thread:$0]  %s366_s12, 16, %s1403_s1, [#allocation3 + $0x3] }
  0x91   : > { %p389_p6 = scmp.gt.s32.totalorder %s1423_s23, 0  ;;  %p789_p0 = scmp.lt.s32.totalorder %s1423_s23, 63 }
  0x92   : > { %s443_s24 = sadd.s32 6, %s1331_s21  ;;  %p417_p1 = scmp.gt.s32.totalorder %s1426_s25, 0 }
  0x93   : > { %s1630_s23 = smov (!%p389_p6, %s1423_s23), 0  ;;  %s1226_s16 = smov [#allocation2 + $0x5]  }
  0x94   : > { %s1632_s23 = smov (!%p789_p0, %s1630_s23), 63  ;;  %s432_s11 = sshll.u32 %s1226_s16, 4  ;;  %s433_s11 = int_to_ptr.vmem [resolvable:$true] %s432_s11 }
  0x95   : > { %s418_s17 = scalar_select %p417_p1, %s1426_s25, 0 }
  0x96   : > { %s794_s18 = sshll.u32 %s1632_s23, 4  ;;  %s1453_s27 = sld [smem:[#allocation5 + %s443_s24]] }
  0x97   : > { %s394_s8 = scalar_lea.hbm %s1577_s2, %s794_s18 }
  0x98   : > { %s1025_s22 = scalar_lea.hbm %s394_s8, 16  ;;  %p1028_p4 = scmp.lt.u32.totalorder %s394_s8, %s1577_s2 }
  0x99   : > { %p1026_p3 = scmp.ne.s32.totalorder %s394_s8, %s1025_s22  ;;  %p1029_p8 = scmp.lt.u32.totalorder %s1357_s9, %s1025_s22 }
  0x9a   : > { %p1031_p11 = scmp.lt.u32.totalorder %s1025_s22, %s394_s8 }
  0x9b   : > { %p1030_p10 = por %p1029_p8, %p1028_p4 }
  0x9d   : > { %p1032_p5 = por %p1031_p11, %p1030_p10 }
  0x9f   : > { %p1033_p12 = pnand %p1032_p5, %p1026_p3 }
  0xa1   : > { %1036 = shalt.err (!%p1033_p12)  }
  0xa2   : > { %s1037_s23 = scalar_lea.vmem %s1431_s0, 16  ;;  %p1042_p6 = scmp.lt.s32.totalorder %s1431_s0, %s1337_s28 }
  0xa3   : > { %p1038_p7 = scmp.ne.s32.totalorder %s1431_s0, %s1037_s23  ;;  %p1043_p0 = scmp.lt.s32.totalorder %s1366_s13, %s1037_s23 }
  0xa5   : > { %p1044_p1 = por %p1043_p0, %p1042_p6 }
  0xa7   : > { %p1045_p2 = pnand %p1044_p1, %p1038_p7 }
  0xa9   : > { %1048 = shalt.err (!%p1045_p2)  }
  0xaa   : > { %407 = dma.hbm_to_vmem [thread:$0]  %s394_s8, 16, %s1431_s0, [#allocation3 + $0x4] }
  0xab   : > { %p1604_p4 = scmp.lt.s32.totalorder %s1426_s25, 63  ;;  %s471_s14 = sadd.s32 7, %s1331_s21 }
  0xad   : > { %s1634_s17 = smov (!%p1604_p4, %s418_s17), 63 }
  0xae   : > { %s801_s26 = sshll.u32 %s1634_s17, 4 }
  0xaf   : > { %s422_s16 = scalar_lea.hbm %s1577_s2, %s801_s26 }
  0xb0   : > { %s1049_s19 = scalar_lea.hbm %s422_s16, 16  ;;  %p1052_p2 = scmp.lt.u32.totalorder %s422_s16, %s1577_s2 }
  0xb1   : > { %p1050_p3 = scmp.ne.s32.totalorder %s422_s16, %s1049_s19  ;;  %p1053_p8 = scmp.lt.u32.totalorder %s1357_s9, %s1049_s19 }
  0xb2   : > { %p1055_p11 = scmp.lt.u32.totalorder %s1049_s19, %s422_s16 }
  0xb3   : > { %p1054_p10 = por %p1053_p8, %p1052_p2 }
  0xb5   : > { %p1056_p5 = por %p1055_p11, %p1054_p10 }
  0xb7   : > { %p1057_p12 = pnand %p1056_p5, %p1050_p3 }
  0xb9   : > { %1060 = shalt.err (!%p1057_p12)  }
  0xba   : > { %s1061_s0 = scalar_lea.vmem %s433_s11, 16  ;;  %p1066_p6 = scmp.lt.s32.totalorder %s433_s11, %s1337_s28 }
  0xbb   : > { %p1062_p7 = scmp.ne.s32.totalorder %s433_s11, %s1061_s0  ;;  %p1067_p0 = scmp.lt.s32.totalorder %s1366_s13, %s1061_s0 }
  0xbd   : > { %p1068_p1 = por %p1067_p0, %p1066_p6 }
  0xbf   : > { %p1069_p4 = pnand %p1068_p1, %p1062_p7 }
  0xc1   : > { %1072 = shalt.err (!%p1069_p4)  }
  0xc2   : > { %435 = dma.hbm_to_vmem [thread:$0]  %s422_s16, 16, %s433_s11, [#allocation3 + $0x5] }
  0xc3   : > { %p445_p13 = scmp.gt.s32.totalorder %s1453_s27, 0  ;;  %p803_p2 = scmp.lt.s32.totalorder %s1453_s27, 63 }
  0xc4   : > { %s1227_s25 = smov [#allocation2 + $0x6]   ;;  %s472_s8 = sld [smem:[#allocation5 + %s471_s14]] }
  0xc5   : > { %s460_s17 = sshll.u32 %s1227_s25, 4  ;;  %s1636_s27 = smov (!%p445_p13, %s1453_s27), 0  ;;  %s461_s17 = int_to_ptr.vmem [resolvable:$true] %s460_s17 }
  0xc6   : > { %s1638_s27 = smov (!%p803_p2, %s1636_s27), 63 }
  0xc7   : > { %s808_s12 = sshll.u32 %s1638_s27, 4 }
  0xc8   : > { %s450_s24 = scalar_lea.hbm %s1577_s2, %s808_s12 }
  0xc9   : > { %s1073_s18 = scalar_lea.hbm %s450_s24, 16  ;;  %p1076_p10 = scmp.lt.u32.totalorder %s450_s24, %s1577_s2 }
  0xca   : > { %p473_p3 = scmp.gt.s32.totalorder %s472_s8, 0  ;;  %p1074_p8 = scmp.ne.s32.totalorder %s450_s24, %s1073_s18 }
  0xcb   : > { %p1077_p11 = scmp.lt.u32.totalorder %s1357_s9, %s1073_s18  ;;  %p1079_p12 = scmp.lt.u32.totalorder %s1073_s18, %s450_s24 }
  0xcd   : > { %p1078_p5 = por %p1077_p11, %p1076_p10 }
  0xcf   : > { %p1080_p7 = por %p1079_p12, %p1078_p5 }
  0xd1   : > { %p1081_p6 = pnand %p1080_p7, %p1074_p8 }
  0xd3   : > { %1084 = shalt.err (!%p1081_p6)  }
  0xd4   : > { %s1085_s14 = scalar_lea.vmem %s461_s17, 16  ;;  %p1090_p0 = scmp.lt.s32.totalorder %s461_s17, %s1337_s28 }
  0xd5   : > { %p1086_p13 = scmp.ne.s32.totalorder %s461_s17, %s1085_s14  ;;  %p1091_p1 = scmp.lt.s32.totalorder %s1366_s13, %s1085_s14 }
  0xd7   : > { %p1092_p4 = por %p1091_p1, %p1090_p0 }
  0xd9   : > { %p1093_p2 = pnand %p1092_p4, %p1086_p13 }
  0xdb   : > { %1096 = shalt.err (!%p1093_p2)  }
  0xdc   : > { %463 = dma.hbm_to_vmem [thread:$0]  %s450_s24, 16, %s461_s17, [#allocation3 + $0x6] }
  0xdd   : > { %s474_s27 = scalar_select %p473_p3, %s472_s8, 0 }
  0xde   : > { %p810_p9 = scmp.lt.s32.totalorder %s472_s8, 63  ;;  %s1228_s19 = smov [#allocation2 + $0x7]  }
  0xdf   : > { %s488_s22 = sshll.u32 %s1228_s19, 4  ;;  %s489_s22 = int_to_ptr.vmem [resolvable:$true] %s488_s22 }
  0xe0   : > { %s1640_s27 = smov (!%p810_p9, %s474_s27), 63 }
  0xe1   : > { %s815_s1 = sshll.u32 %s1640_s27, 4 }
  0xe2   : > { %s478_s12 = scalar_lea.hbm %s1577_s2, %s815_s1 }
  0xe3   : > { %s1097_s23 = scalar_lea.hbm %s478_s12, 16  ;;  %p1100_p10 = scmp.lt.u32.totalorder %s478_s12, %s1577_s2 }
  0xe4   : > { %p1098_p8 = scmp.ne.s32.totalorder %s478_s12, %s1097_s23  ;;  %p1101_p11 = scmp.lt.u32.totalorder %s1357_s9, %s1097_s23 }
  0xe5   : > { %p1103_p12 = scmp.lt.u32.totalorder %s1097_s23, %s478_s12 }
  0xe6   : > { %p1102_p5 = por %p1101_p11, %p1100_p10 }
  0xe8   : > { %p1104_p3 = por %p1103_p12, %p1102_p5 }
  0xea   : > { %p1105_p7 = pnand %p1104_p3, %p1098_p8 }
  0xec   : > { %1108 = shalt.err (!%p1105_p7)  }
  0xed   : > { %s1109_s17 = scalar_lea.vmem %s489_s22, 16  ;;  %p1114_p6 = scmp.lt.s32.totalorder %s489_s22, %s1337_s28 }
  0xee   : > { %p1110_p9 = scmp.ne.s32.totalorder %s489_s22, %s1109_s17  ;;  %p1115_p13 = scmp.lt.s32.totalorder %s1366_s13, %s1109_s17 }
  0xf0   : > { %p1116_p0 = por %p1115_p13, %p1114_p6 }
  0xf2   : > { %p1117_p1 = pnand %p1116_p0, %p1110_p9 }
  0xf4   : > { %1120 = shalt.err (!%p1117_p1)  }
  0xf5   : > { %491 = dma.hbm_to_vmem [thread:$0]  %s478_s12, 16, %s489_s22, [#allocation3 + $0x7]  ;;  %v502_v4 = vpop.permute.xlu0 %501  ;;  %v816_v5 = vld [vmem:[%s1579_s4 + $0x1] ss:$0 sm:$0xff]  ;;  %v817_v6 = vld [vmem:[%s1579_s4 + $0x2] ss:$0 sm:$0xff] }
  0xf6   : > { %vm503_vm2 = vcmp.eq.s32.totalorder %v502_v4, 1  ;;  %v818_v7 = vld [vmem:[%s1579_s4] ss:$0 sm:$0xff]  ;;  %s258_s27 = scalar_lea.vmem [#allocation6], %s1329_s20 }
  0xf7   : > { %v492_v8 = vld [vmem:[%s1578_s3] sm:$0xff]  ;;  %v512_v10 = vsel %vm503_vm2, %v816_v5, %v817_v6 }
  0xf9   : > { %v516_v9 = vpop.permute.xlu0 %515 }
  0xfa   : > { %vm517_vm3 = vcmp.eq.s32.totalorder %v516_v9, 1 }
  0xfb   : > { %v522_v11 = vsel %vm517_vm3, %v818_v7, %v512_v10 }
  0xfc   : > { %v523_v12 = vadd.f32 %v522_v11, %v492_v8 }
  0xfd   : > { %1175 = dma.done.wait [#allocation3], 16 }
  0xfe   : > { %1176 = vsyncadd [#allocation3], 4294967280 }
  0xff   : > { %1177 = dma.done.wait [#allocation3 + $0x1], 16 }
 0x100   : > { %1178 = vsyncadd [#allocation3 + $0x1], 4294967280 }
 0x101   : > { %1179 = dma.done.wait [#allocation3 + $0x2], 16 }
 0x102   : > { %1180 = vsyncadd [#allocation3 + $0x2], 4294967280 }
 0x103   : > { %1181 = dma.done.wait [#allocation3 + $0x3], 16 }
 0x104   : > { %1182 = vsyncadd [#allocation3 + $0x3], 4294967280 }
 0x105   : > { %1183 = dma.done.wait [#allocation3 + $0x4], 16 }
 0x106   : > { %1184 = vsyncadd [#allocation3 + $0x4], 4294967280 }
 0x107   : > { %1185 = dma.done.wait [#allocation3 + $0x5], 16 }
 0x108   : > { %1186 = vsyncadd [#allocation3 + $0x5], 4294967280 }
 0x109   : > { %1187 = dma.done.wait [#allocation3 + $0x6], 16 }
 0x10a   : > { %1188 = vsyncadd [#allocation3 + $0x6], 4294967280 }
 0x10b   : > { %1189 = dma.done.wait [#allocation3 + $0x7], 16 }
 0x10c   : > { %1190 = vsyncadd [#allocation3 + $0x7], 4294967280  ;;  %v549_v13 = vld [vmem:[#allocation2] sm:$0xff]  ;;  %s595_s25 = sshll.u32 %s258_s27, 4  ;;  %s1524_s26 = scalar_lea.hbm %s1582_s7, %s1331_s21  ;;  %s1526_s25 = int_to_ptr.vmem [resolvable:$true] %s595_s25 }
 0x10d   : > { %v550_v14 = vadd.f32 %v549_v13, %v523_v12  ;;  %v819_v23 = vld [vmem:[%s1580_s5] ss:$0 sm:$0xff]  ;;  %s1605_s18 = sand.u32 1, %s1201_s30   ;;  %s1121_s8 = scalar_lea.vmem %s1526_s25, 128 }
 0x10e   : > { %v820_v25 = vld [vmem:[%s1581_s6] ss:$0 sm:$0xff]  ;;  %s581_s17 = scalar_lea.sflag [#allocation7], %s1605_s18  ;;  %p1122_p4 = scmp.ne.s32.totalorder %s1526_s25, %s1121_s8 }
 0x10f   : > { %551 = vadd.xlane.f32.xlu0 %v550_v14  ;;  %p1606_p2 = scmp.ne.s32.totalorder %s1593_s15, 0  ;;  %s1229_s24 = smov [#allocation6]  }
 0x110   : > { %s1125_s9 = sshll.u32 %s1229_s24, 4  ;;  %s1126_s9 = int_to_ptr.vmem [resolvable:$false] %s1125_s9 }
 0x111   : > { %p1123_p8 = pnand %p1122_p4, %p1606_p2  ;;  %s1127_s11 = scalar_lea.vmem %s1126_s9, 256 }
 0x112   : > { %p1128_p11 = scmp.lt.s32.totalorder %s1526_s25, %s1126_s9  ;;  %p1129_p5 = scmp.lt.s32.totalorder %s1127_s11, %s1121_s8 }
 0x113   : > { %p1124_p10 = pneg %p1123_p8 }
 0x114   : > { %p1130_p12 = por %p1129_p5, %p1128_p11 }
 0x116   : > { %p1131_p3 = pnand %p1130_p12, %p1124_p10 }
 0x19c   : > { %v552_v15 = vpop.xlane.xlu0 %551 }
 0x19d   : > { %v554_v16 = vmul.f32 0.0078125, %v552_v15 }
 0x19f   : > { %v555_v17 = vsub.f32 %v550_v14, %v554_v16 }
 0x1a1   : > { %v556_v18 = vmul.f32 %v555_v17, %v555_v17 }
 0x1a3   : > { %557 = vadd.xlane.f32.xlu0 %v556_v18 }
 0x230   : > { %v558_v19 = vpop.xlane.xlu0 %557 }
 0x231   : > { %v559_v20 = vmul.f32 0.0078125, %v558_v19 }
 0x233   : > { %v560_v21 = vadd.f32 1e-06, %v559_v20 }
 0x235   : > { %915 = vrsqrt.f32 %v560_v21 }
 0x23f   : > { %v916_v22 = vpop.eup %915 }
 0x240   : > { %v562_v24 = vmul.f32 %v916_v22, %v555_v17 }
 0x242   : > { %v570_v26 = vmul.f32 %v819_v23, %v562_v24 }
 0x244   : > { %v578_v27 = vadd.f32 %v820_v25, %v570_v26 }
 0x246   : > { %579 = vst [vmem:[%s258_s27] sm:$0xff] %v578_v27 }
 0x247   : > { %1134 = shalt.err (!%p1131_p3)
}
 0x248   : > { %s1135_s20 = scalar_lea.hbm %s1524_s26, 128  ;;  %s1139_s14 = scalar_lea.hbm %s1582_s7, 256 }
 0x249   : > { %p1136_p7 = scmp.ne.s32.totalorder %s1524_s26, %s1135_s20  ;;  %p1140_p13 = scmp.lt.u32.totalorder %s1524_s26, %s1582_s7 }
 0x24a   : > { %p1141_p0 = scmp.lt.u32.totalorder %s1139_s14, %s1135_s20  ;;  %p1143_p4 = scmp.lt.u32.totalorder %s1135_s20, %s1524_s26 }
 0x24b   : > { %p1137_p9 = pnand %p1136_p7, %p1606_p2 }
 0x24c   : > { %p1142_p1 = por %p1141_p0, %p1140_p13 }
 0x24d   : > { %p1138_p6 = pneg %p1137_p9 }
 0x24e   : > { %p1144_p8 = por %p1143_p4, %p1142_p1 }
 0x250   : > { %p1145_p10 = pnand %p1144_p8, %p1138_p6 }
 0x252   : > { %1148 = shalt.err (!%p1145_p10)
}
 0x253   : > { %849 = dma.vmem_to_hbm [thread:$0]  (%p1606_p2), %s1526_s25, 128, %s1524_s26, %s581_s17  }
 0x254 PF: > { %s1607_s27 = sld [smem:[#allocation39_spill]]  ;;  %p855_p11 = scmp.ge.s32.totalorder %s1217_s10, 2 }
 0x255   : > { %s607_s19 = sand.u32 1, %s1197_s29  }
 0x256   : > { %s608_s22 = scalar_lea.sflag [#allocation7], %s607_s19 }
 0x25a   : > { %p1608_p5 = scmp.ne.s32.totalorder %s1607_s27, 0 }
 0x25c   : > { %p852_p12 = pnand %p855_p11, %p1608_p5 }
 0x25e   : > { %1192 = dma.done.wait (!%p852_p12), %s608_s22, 128  }
 0x25f   : > { %1194 = vsyncadd (!%p852_p12), %s608_s22, 4294967168  ;;  %s26_s10 = sadd.s32 1, %s1217_s10   ;;  %s1609_s1 = sld [smem:[#allocation36_spill]] }
 0x260   : > { %p23_p3 = scmp.ge.s32.totalorder %s26_s10, 4   ;;  %s1610_s0 = sld [smem:[#allocation40_spill]] }
 0x261   : > { %s1611_s8 = sld [smem:[#allocation37_spill]]  ;;  %s1612_s9 = sld [smem:[#allocation38_spill]] }
 0x262   : > { %s1613_s29 = smov %s1201_s30  ;;  %25 = sbr.rel (!%p23_p3) target bundleno = 19 (0x13), region = 139 }
 0x265   : > { %s1614_s30 = smov %s1609_s1 }
 0x269   :  { %613 = vsyncpa [#allocation7], 1 }
 0x26a   :  { %615 = vsyncpa [#allocation7 + $0x1], 1 }
 0x26b   :  { %616 = vsyncmov [#allocation3] }
 0x26e   :  { %s617_s15 = vpop.sfrf %616 }
 0x26f   :  { %p825_p2 = scmp.ne.s32.totalorder %s617_s15, 0 }
 0x271   :  { %621 = shalt.err (%p825_p2)  }
 0x272   :  { %623 = vsyncmov [#allocation3 + $0x1] }
 0x275   :  { %s624_s25 = vpop.sfrf %623 }
 0x276   :  { %p826_p7 = scmp.ne.s32.totalorder %s624_s25, 0 }
 0x278   :  { %628 = shalt.err (%p826_p7)  }
 0x279   :  { %630 = vsyncmov [#allocation3 + $0x2] }
 0x27c   :  { %s631_s12 = vpop.sfrf %630 }
 0x27d   :  { %p827_p9 = scmp.ne.s32.totalorder %s631_s12, 0 }
 0x27f   :  { %635 = shalt.err (%p827_p9)  }
 0x280   :  { %637 = vsyncmov [#allocation3 + $0x3] }
 0x283   :  { %s638_s23 = vpop.sfrf %637 }
 0x284   :  { %p828_p6 = scmp.ne.s32.totalorder %s638_s23, 0 }
 0x286   :  { %642 = shalt.err (%p828_p6)  }
 0x287   :  { %644 = vsyncmov [#allocation3 + $0x4] }
 0x28a   :  { %s645_s10 = vpop.sfrf %644 }
 0x28b   :  { %p829_p13 = scmp.ne.s32.totalorder %s645_s10, 0 }
 0x28d   :  { %649 = shalt.err (%p829_p13)  }
 0x28e   :  { %651 = vsyncmov [#allocation3 + $0x5] }
 0x291   :  { %s652_s2 = vpop.sfrf %651 }
 0x292   :  { %p830_p0 = scmp.ne.s32.totalorder %s652_s2, 0 }
 0x294   :  { %656 = shalt.err (%p830_p0)  }
 0x295   :  { %658 = vsyncmov [#allocation3 + $0x6] }
 0x298   :  { %s659_s3 = vpop.sfrf %658 }
 0x299   :  { %p831_p1 = scmp.ne.s32.totalorder %s659_s3, 0 }
 0x29b   :  { %663 = shalt.err (%p831_p1)  }
 0x29c   :  { %665 = vsyncmov [#allocation3 + $0x7] }
 0x29f   :  { %s666_s4 = vpop.sfrf %665 }
 0x2a0   :  { %p832_p4 = scmp.ne.s32.totalorder %s666_s4, 0 }
 0x2a2   :  { %670 = shalt.err (%p832_p4)  }

</bundles_post_ra>
